<compile_context>
chip_gen: v5e
topology: v5e:2x2
jax: 0.10.0
libtpu: 0.0.40
codegen_flags: <defaults>
</compile_context>

<pallas_src>
import jax
import jax.numpy as jnp
from jax.experimental import pallas as pl
from jax.experimental.pallas import tpu as pltpu

LANES = 128    # TPU lane width
BIAS_W = 256   # widest bias row (bs1)


# ------------------------------- kernel ----------------------------------- #

def critic_kernel(sensor_ref, tail_ref, ws1_ref, ws2_ref, wm1_ref, wsmall_ref,
                  bias_ref, out_ref):
    f32 = jnp.float32
    bf16 = jnp.bfloat16
    Bp = sensor_ref.shape[0]            # padded batch (multiple of 8), static

    def bdot(x, w):
        # bf16 x bf16 -> f32 accumulation on the MXU.
        return jnp.dot(x.astype(bf16), w, preferred_element_type=f32)

    def bias(i):
        # (8, 256) slab, already replicated across sublanes at pack time
        # -> no broadcast_in_dim before the add.
        b = bias_ref[i]
        if Bp > 8:                       # static Python branch
            b = jnp.concatenate([b] * (Bp // 8), axis=0)
        return b

    # ---- sensor_model: Linear+ReLU x4 (sensor_dim -> 256 -> 128 -> 64 -> 32) ----
    # Layers 3/4 use zero-padded (128,128) weights + zero-padded biases, so the
    # padded output columns stay exactly zero through the ReLUs.
    h = jnp.maximum(bdot(sensor_ref[...], ws1_ref[...]) + bias(0), 0.0)        # (Bp, 256)
    h = jnp.maximum(bdot(h, ws2_ref[...]) + bias(1)[:, :LANES], 0.0)           # (Bp, 128)
    h = jnp.maximum(bdot(h, wsmall_ref[0]) + bias(2)[:, :LANES], 0.0)          # cols 64: == 0
    h = jnp.maximum(bdot(h, wsmall_ref[1]) + bias(3)[:, :LANES], 0.0)          # cols 32: == 0

    # ---- state_model on concat([sensor_out, state, action], 1) ----
    # Single fused matmul: [h | tail] (Bp,256) @ stacked wm1 (256,128).
    # Padded columns of h/tail are exactly zero, matching zero weight rows.
    x = jnp.concatenate([h, tail_ref[...]], axis=1)                            # (Bp, 256)
    g = jnp.maximum(bdot(x, wm1_ref[...]) + bias(4)[:, :LANES], 0.0)
    g = jnp.maximum(bdot(g, wsmall_ref[2]) + bias(5)[:, :LANES], 0.0)
    # Final Linear(32 -> 1) with weight zero-padded to (128,128): lane-dense
    # output store, the Q value lives in column 0.
    out_ref[...] = bdot(g, wsmall_ref[3]) + bias(6)[:, :LANES]


# ------------------------------ wrapper ------------------------------------ #

@jax.jit
def critic_forward(state, sensor, action, packed):
    """packed = (ws1_bf16 [K_pad,256], ws2_bf16 [256,128], wm1_bf16 [256,128],
                 wsmall_bf16 [4,128,128], biases_f32 [7,8,256])."""
    ws1, ws2, wm1_full, wsmall, biases = packed
    B = state.shape[0]
    Bp = ((B + 7) // 8) * 8                  # f32 sublane alignment
    Kp = ws1.shape[0]

    # Raw-input preprocessing (fused into this single jit dispatch):
    # pad sensor's batch/feature dims to match the row-padded ws1, and
    # concat+pad [state | action] into one lane-aligned "tail" operand.
    sensor_p = jnp.pad(sensor, ((0, Bp - B), (0, Kp - sensor.shape[1])))
    tail = jnp.concatenate([state, action], axis=1)
    tail = jnp.pad(tail, ((0, Bp - B), (0, LANES - tail.shape[1])))

    flops = 2 * Bp * (Kp * 256 + 2 * 256 * 128 + 4 * 128 * 128)
    bytes_accessed = (sensor_p.size * 4 + tail.size * 4
                      + ws1.size * 2 + ws2.size * 2 + wm1_full.size * 2
                      + wsmall.size * 2 + biases.size * 4 + Bp * LANES * 4)

    # No grid -> no pipelining benefit: place every operand whole in VMEM.
    vmem = pl.BlockSpec(memory_space=pltpu.MemorySpace.VMEM)

    out = pl.pallas_call(
        critic_kernel,
        out_shape=jax.ShapeDtypeStruct((Bp, LANES), jnp.float32),
        in_specs=[vmem] * 7,
        out_specs=vmem,
        cost_estimate=pl.CostEstimate(flops=flops, transcendentals=0,
                                      bytes_accessed=bytes_accessed),
    )(sensor_p, tail, ws1, ws2, wm1_full, wsmall, biases)
    return out[:B, :1]


# ----------------------------- parameters --------------------------------- #

def xavier_uniform(key, fan_in, fan_out):
    limit = (6.0 / (fan_in + fan_out)) ** 0.5
    return jax.random.uniform(key, (fan_in, fan_out), jnp.float32, -limit, limit)


def make_params(key, state_dim, sensor_dim, action_dim):
    """PyTorch-structured f32 params; weights stored (in, out) so fwd is x @ W + b."""
    ks = jax.random.split(key, 14)

    def bias(k, n, fan_in):
        bound = 1.0 / (fan_in ** 0.5)
        return jax.random.uniform(k, (n,), jnp.float32, -bound, bound)

    ws1 = xavier_uniform(ks[0], sensor_dim, 256); bs1 = bias(ks[1], 256, sensor_dim)
    ws2 = xavier_uniform(ks[2], 256, 128);        bs2 = bias(ks[3], 128, 256)
    ws3 = xavier_uniform(ks[4], 128, 64);         bs3 = bias(ks[5], 64, 128)
    ws4 = xavier_uniform(ks[6], 64, 32);          bs4 = bias(ks[7], 32, 64)
    in1 = 32 + state_dim + action_dim
    wm1 = xavier_uniform(ks[8], in1, 32);         bm1 = bias(ks[9], 32, in1)
    wm2 = xavier_uniform(ks[10], 32, 32);         bm2 = bias(ks[11], 32, 32)
    wm3 = xavier_uniform(ks[12], 32, 1);          bm3 = bias(ks[13], 1, 32)
    return (ws1, bs1, ws2, bs2, ws3, bs3, ws4, bs4, wm1, bm1, wm2, bm2, wm3, bm3)


def pack_params(params):
    """Pack the 14 PyTorch tensors into 5 TPU-friendly operands.

    Call ONCE (outside the training/eval step) and reuse the result — packing is
    pure weight re-layout, not per-step work."""
    (ws1, bs1, ws2, bs2, ws3, bs3, ws4, bs4,
     wm1, bm1, wm2, bm2, wm3, bm3) = params
    bf16 = jnp.bfloat16

    # ws1: pad the contraction dim (sensor_dim) up to a multiple of 128 so the
    # first matmul is fully tile-aligned (wrapper pads the sensor input to match).
    sensor_dim = ws1.shape[0]
    k_pad = ((sensor_dim + LANES - 1) // LANES) * LANES
    ws1_p = jnp.pad(ws1, ((0, k_pad - sensor_dim), (0, 0))).astype(bf16)
    ws2_p = ws2.astype(bf16)

    def pad_w(w):
        r, c = w.shape
        assert r <= LANES and c <= LANES
        return jnp.pad(w, ((0, LANES - r), (0, LANES - c)))

    # Fused state_model layer-1 weight (256,128):
    #   rows [0,128)   <- wm1 rows for sensor_out (valid rows 0:32)
    #   rows [128,256) <- wm1 rows for [state|action] (the kernel "tail" operand)
    wm1_full = jnp.concatenate([pad_w(wm1[:32]), pad_w(wm1[32:])],
                               axis=0).astype(bf16)

    # Remaining small square weights in one (4,128,128) bf16 slab.
    wsmall = jnp.stack([pad_w(ws3), pad_w(ws4), pad_w(wm2), pad_w(wm3)]).astype(bf16)

    def pad_b(b):
        b = jnp.pad(b, (0, BIAS_W - b.shape[0]))
        return jnp.broadcast_to(b, (8, BIAS_W))          # sublane pre-broadcast

    biases = jnp.stack([pad_b(bs1), pad_b(bs2), pad_b(bs3), pad_b(bs4),
                        pad_b(bm1), pad_b(bm2), pad_b(bm3)])   # (7, 8, 256) f32
    return (ws1_p, ws2_p, wm1_full, wsmall, biases)


# ------------------------------ references -------------------------------- #

def critic_ref_bf16(state, sensor, action, params):
    """Pure-JAX reference mirroring the kernel's numeric path
    (bf16 MXU operands, f32 accumulation, f32 bias/ReLU)."""
    (ws1, bs1, ws2, bs2, ws3, bs3, ws4, bs4,
     wm1, bm1, wm2, bm2, wm3, bm3) = params
    bf16, f32 = jnp.bfloat16, jnp.float32

    def bdot(x, w):
        return jnp.dot(x.astype(bf16), w.astype(bf16), preferred_element_type=f32)

    h = jax.nn.relu(bdot(sensor, ws1) + bs1)
    h = jax.nn.relu(bdot(h, ws2) + bs2)
    h = jax.nn.relu(bdot(h, ws3) + bs3)
    h = jax.nn.relu(bdot(h, ws4) + bs4)
    combine = jnp.concatenate([h, state, action], axis=1)
    g = jax.nn.relu(bdot(combine, wm1) + bm1)
    g = jax.nn.relu(bdot(g, wm2) + bm2)
    return bdot(g, wm3) + bm3


def critic_ref_f32(state, sensor, action, params):
    """Full-precision reference of the PyTorch forward."""
    (ws1, bs1, ws2, bs2, ws3, bs3, ws4, bs4,
     wm1, bm1, wm2, bm2, wm3, bm3) = params
    h = jax.nn.relu(sensor @ ws1 + bs1)
    h = jax.nn.relu(h @ ws2 + bs2)
    h = jax.nn.relu(h @ ws3 + bs3)
    h = jax.nn.relu(h @ ws4 + bs4)
    combine = jnp.concatenate([h, state, action], axis=1)
    g = jax.nn.relu(combine @ wm1 + bm1)
    g = jax.nn.relu(g @ wm2 + bm2)
    return g @ wm3 + bm3


if __name__ == "__main__":
    B, state_dim, sensor_dim, action_dim = 8, 6, 24, 2
    key = jax.random.PRNGKey(0)
    k_state, k_sensor, k_action, k_params = jax.random.split(key, 4)

    state = jax.random.normal(k_state, (B, state_dim), jnp.float32)
    sensor = jax.random.normal(k_sensor, (B, sensor_dim), jnp.float32)
    action = jax.random.normal(k_action, (B, action_dim), jnp.float32)

    params = make_params(k_params, state_dim, sensor_dim, action_dim)
    packed = pack_params(params)        # pack once; reuse every step

    out = critic_forward(state, sensor, action, packed)
    jax.block_until_ready(out)
    assert out.shape == (B, 1)

    ref_b = critic_ref_bf16(state, sensor, action, params)   # same numeric path
    ref_f = critic_ref_f32(state, sensor, action, params)    # exact f32 semantics
    assert jnp.allclose(out, ref_b, atol=2e-3, rtol=2e-3), (
        f"max|out-ref_bf16|={float(jnp.max(jnp.abs(out - ref_b)))}")
    assert jnp.allclose(out, ref_f, atol=1e-1, rtol=1e-1), (
        f"max|out-ref_f32|={float(jnp.max(jnp.abs(out - ref_f)))}")
    print("KERNEL_OK")
</pallas_src>

<mosaic_0001>
module attributes {stable_mosaic.version = 11 : i64} {
  func.func @critic_kernel(%arg0: memref<8x128xf32, #tpu.memory_space<vmem>>, %arg1: memref<8x128xf32, #tpu.memory_space<vmem>>, %arg2: memref<128x256xbf16, #tpu.memory_space<vmem>>, %arg3: memref<256x128xbf16, #tpu.memory_space<vmem>>, %arg4: memref<256x128xbf16, #tpu.memory_space<vmem>>, %arg5: memref<4x128x128xbf16, #tpu.memory_space<vmem>>, %arg6: memref<7x8x256xf32, #tpu.memory_space<vmem>>, %arg7: memref<8x128xf32, #tpu.memory_space<vmem>>) attributes {dimension_semantics = [], scalar_prefetch = 0 : i64, scratch_operands = 0 : i64, tpu.core_type = #tpu.core_type<tc>} {
    %c0 = arith.constant 0 : index
    %c0_0 = arith.constant 0 : index
    %0 = vector.load %arg0[%c0, %c0_0] : memref<8x128xf32, #tpu.memory_space<vmem>>, vector<8x128xf32>
    %c0_1 = arith.constant 0 : index
    %c0_2 = arith.constant 0 : index
    %1 = vector.load %arg2[%c0_1, %c0_2] : memref<128x256xbf16, #tpu.memory_space<vmem>>, vector<128x256xbf16>
    %2 = arith.truncf %0 : vector<8x128xf32> to vector<8x128xbf16>
    %cst = arith.constant dense<0.000000e+00> : vector<8x256xf32>
    %3 = tpu.matmul %2, %1, %cst {dimension_numbers = #tpu.dot_dimension_numbers<[1], [0], [0], [1], [0, 0, 1, 1], [], []>} : vector<8x128xbf16>, vector<128x256xbf16>, vector<8x256xf32> -> vector<8x256xf32>
    %c0_3 = arith.constant 0 : index
    %c0_4 = arith.constant 0 : index
    %c0_5 = arith.constant 0 : index
    %4 = vector.load %arg6[%c0_3, %c0_4, %c0_5] : memref<7x8x256xf32, #tpu.memory_space<vmem>>, vector<1x8x256xf32>
    %5 = vector.shape_cast %4 : vector<1x8x256xf32> to vector<8x256xf32>
    %6 = arith.addf %3, %5 : vector<8x256xf32>
    %cst_6 = arith.constant 0.000000e+00 : f32
    %7 = vector.broadcast %cst_6 : f32 to vector<8x256xf32>
    %8 = arith.maximumf %6, %7 : vector<8x256xf32>
    %c0_7 = arith.constant 0 : index
    %c0_8 = arith.constant 0 : index
    %9 = vector.load %arg3[%c0_7, %c0_8] : memref<256x128xbf16, #tpu.memory_space<vmem>>, vector<256x128xbf16>
    %10 = arith.truncf %8 : vector<8x256xf32> to vector<8x256xbf16>
    %cst_9 = arith.constant dense<0.000000e+00> : vector<8x128xf32>
    %11 = tpu.matmul %10, %9, %cst_9 {dimension_numbers = #tpu.dot_dimension_numbers<[1], [0], [0], [1], [0, 0, 1, 1], [], []>} : vector<8x256xbf16>, vector<256x128xbf16>, vector<8x128xf32> -> vector<8x128xf32>
    %c1 = arith.constant 1 : index
    %c0_10 = arith.constant 0 : index
    %c0_11 = arith.constant 0 : index
    %12 = vector.load %arg6[%c1, %c0_10, %c0_11] : memref<7x8x256xf32, #tpu.memory_space<vmem>>, vector<1x8x256xf32>
    %13 = vector.shape_cast %12 : vector<1x8x256xf32> to vector<8x256xf32>
    %14 = vector.extract_strided_slice %13 {offsets = [0, 0], sizes = [8, 128], strides = [1, 1]} : vector<8x256xf32> to vector<8x128xf32>
    %15 = arith.addf %11, %14 : vector<8x128xf32>
    %cst_12 = arith.constant 0.000000e+00 : f32
    %16 = vector.broadcast %cst_12 : f32 to vector<8x128xf32>
    %17 = arith.maximumf %15, %16 : vector<8x128xf32>
    %c0_13 = arith.constant 0 : index
    %c0_14 = arith.constant 0 : index
    %c0_15 = arith.constant 0 : index
    %18 = vector.load %arg5[%c0_13, %c0_14, %c0_15] : memref<4x128x128xbf16, #tpu.memory_space<vmem>>, vector<1x128x128xbf16>
    %19 = vector.shape_cast %18 : vector<1x128x128xbf16> to vector<128x128xbf16>
    %20 = arith.truncf %17 : vector<8x128xf32> to vector<8x128xbf16>
    %cst_16 = arith.constant dense<0.000000e+00> : vector<8x128xf32>
    %21 = tpu.matmul %20, %19, %cst_16 {dimension_numbers = #tpu.dot_dimension_numbers<[1], [0], [0], [1], [0, 0, 1, 1], [], []>} : vector<8x128xbf16>, vector<128x128xbf16>, vector<8x128xf32> -> vector<8x128xf32>
    %c2 = arith.constant 2 : index
    %c0_17 = arith.constant 0 : index
    %c0_18 = arith.constant 0 : index
    %22 = vector.load %arg6[%c2, %c0_17, %c0_18] : memref<7x8x256xf32, #tpu.memory_space<vmem>>, vector<1x8x256xf32>
    %23 = vector.shape_cast %22 : vector<1x8x256xf32> to vector<8x256xf32>
    %24 = vector.extract_strided_slice %23 {offsets = [0, 0], sizes = [8, 128], strides = [1, 1]} : vector<8x256xf32> to vector<8x128xf32>
    %25 = arith.addf %21, %24 : vector<8x128xf32>
    %cst_19 = arith.constant 0.000000e+00 : f32
    %26 = vector.broadcast %cst_19 : f32 to vector<8x128xf32>
    %27 = arith.maximumf %25, %26 : vector<8x128xf32>
    %c1_20 = arith.constant 1 : index
    %c0_21 = arith.constant 0 : index
    %c0_22 = arith.constant 0 : index
    %28 = vector.load %arg5[%c1_20, %c0_21, %c0_22] : memref<4x128x128xbf16, #tpu.memory_space<vmem>>, vector<1x128x128xbf16>
    %29 = vector.shape_cast %28 : vector<1x128x128xbf16> to vector<128x128xbf16>
    %30 = arith.truncf %27 : vector<8x128xf32> to vector<8x128xbf16>
    %cst_23 = arith.constant dense<0.000000e+00> : vector<8x128xf32>
    %31 = tpu.matmul %30, %29, %cst_23 {dimension_numbers = #tpu.dot_dimension_numbers<[1], [0], [0], [1], [0, 0, 1, 1], [], []>} : vector<8x128xbf16>, vector<128x128xbf16>, vector<8x128xf32> -> vector<8x128xf32>
    %c3 = arith.constant 3 : index
    %c0_24 = arith.constant 0 : index
    %c0_25 = arith.constant 0 : index
    %32 = vector.load %arg6[%c3, %c0_24, %c0_25] : memref<7x8x256xf32, #tpu.memory_space<vmem>>, vector<1x8x256xf32>
    %33 = vector.shape_cast %32 : vector<1x8x256xf32> to vector<8x256xf32>
    %34 = vector.extract_strided_slice %33 {offsets = [0, 0], sizes = [8, 128], strides = [1, 1]} : vector<8x256xf32> to vector<8x128xf32>
    %35 = arith.addf %31, %34 : vector<8x128xf32>
    %cst_26 = arith.constant 0.000000e+00 : f32
    %36 = vector.broadcast %cst_26 : f32 to vector<8x128xf32>
    %37 = arith.maximumf %35, %36 : vector<8x128xf32>
    %c0_27 = arith.constant 0 : index
    %c0_28 = arith.constant 0 : index
    %38 = vector.load %arg1[%c0_27, %c0_28] : memref<8x128xf32, #tpu.memory_space<vmem>>, vector<8x128xf32>
    %39 = tpu.concatenate %37, %38 in 1 : vector<8x128xf32>, vector<8x128xf32> -> vector<8x256xf32>
    %c0_29 = arith.constant 0 : index
    %c0_30 = arith.constant 0 : index
    %40 = vector.load %arg4[%c0_29, %c0_30] : memref<256x128xbf16, #tpu.memory_space<vmem>>, vector<256x128xbf16>
    %41 = arith.truncf %39 : vector<8x256xf32> to vector<8x256xbf16>
    %cst_31 = arith.constant dense<0.000000e+00> : vector<8x128xf32>
    %42 = tpu.matmul %41, %40, %cst_31 {dimension_numbers = #tpu.dot_dimension_numbers<[1], [0], [0], [1], [0, 0, 1, 1], [], []>} : vector<8x256xbf16>, vector<256x128xbf16>, vector<8x128xf32> -> vector<8x128xf32>
    %c4 = arith.constant 4 : index
    %c0_32 = arith.constant 0 : index
    %c0_33 = arith.constant 0 : index
    %43 = vector.load %arg6[%c4, %c0_32, %c0_33] : memref<7x8x256xf32, #tpu.memory_space<vmem>>, vector<1x8x256xf32>
    %44 = vector.shape_cast %43 : vector<1x8x256xf32> to vector<8x256xf32>
    %45 = vector.extract_strided_slice %44 {offsets = [0, 0], sizes = [8, 128], strides = [1, 1]} : vector<8x256xf32> to vector<8x128xf32>
    %46 = arith.addf %42, %45 : vector<8x128xf32>
    %cst_34 = arith.constant 0.000000e+00 : f32
    %47 = vector.broadcast %cst_34 : f32 to vector<8x128xf32>
    %48 = arith.maximumf %46, %47 : vector<8x128xf32>
    %c2_35 = arith.constant 2 : index
    %c0_36 = arith.constant 0 : index
    %c0_37 = arith.constant 0 : index
    %49 = vector.load %arg5[%c2_35, %c0_36, %c0_37] : memref<4x128x128xbf16, #tpu.memory_space<vmem>>, vector<1x128x128xbf16>
    %50 = vector.shape_cast %49 : vector<1x128x128xbf16> to vector<128x128xbf16>
    %51 = arith.truncf %48 : vector<8x128xf32> to vector<8x128xbf16>
    %cst_38 = arith.constant dense<0.000000e+00> : vector<8x128xf32>
    %52 = tpu.matmul %51, %50, %cst_38 {dimension_numbers = #tpu.dot_dimension_numbers<[1], [0], [0], [1], [0, 0, 1, 1], [], []>} : vector<8x128xbf16>, vector<128x128xbf16>, vector<8x128xf32> -> vector<8x128xf32>
    %c5 = arith.constant 5 : index
    %c0_39 = arith.constant 0 : index
    %c0_40 = arith.constant 0 : index
    %53 = vector.load %arg6[%c5, %c0_39, %c0_40] : memref<7x8x256xf32, #tpu.memory_space<vmem>>, vector<1x8x256xf32>
    %54 = vector.shape_cast %53 : vector<1x8x256xf32> to vector<8x256xf32>
    %55 = vector.extract_strided_slice %54 {offsets = [0, 0], sizes = [8, 128], strides = [1, 1]} : vector<8x256xf32> to vector<8x128xf32>
    %56 = arith.addf %52, %55 : vector<8x128xf32>
    %cst_41 = arith.constant 0.000000e+00 : f32
    %57 = vector.broadcast %cst_41 : f32 to vector<8x128xf32>
    %58 = arith.maximumf %56, %57 : vector<8x128xf32>
    %c3_42 = arith.constant 3 : index
    %c0_43 = arith.constant 0 : index
    %c0_44 = arith.constant 0 : index
    %59 = vector.load %arg5[%c3_42, %c0_43, %c0_44] : memref<4x128x128xbf16, #tpu.memory_space<vmem>>, vector<1x128x128xbf16>
    %60 = vector.shape_cast %59 : vector<1x128x128xbf16> to vector<128x128xbf16>
    %61 = arith.truncf %58 : vector<8x128xf32> to vector<8x128xbf16>
    %cst_45 = arith.constant dense<0.000000e+00> : vector<8x128xf32>
    %62 = tpu.matmul %61, %60, %cst_45 {dimension_numbers = #tpu.dot_dimension_numbers<[1], [0], [0], [1], [0, 0, 1, 1], [], []>} : vector<8x128xbf16>, vector<128x128xbf16>, vector<8x128xf32> -> vector<8x128xf32>
    %c6 = arith.constant 6 : index
    %c0_46 = arith.constant 0 : index
    %c0_47 = arith.constant 0 : index
    %63 = vector.load %arg6[%c6, %c0_46, %c0_47] : memref<7x8x256xf32, #tpu.memory_space<vmem>>, vector<1x8x256xf32>
    %64 = vector.shape_cast %63 : vector<1x8x256xf32> to vector<8x256xf32>
    %65 = vector.extract_strided_slice %64 {offsets = [0, 0], sizes = [8, 128], strides = [1, 1]} : vector<8x256xf32> to vector<8x128xf32>
    %66 = arith.addf %62, %65 : vector<8x128xf32>
    %c0_48 = arith.constant 0 : index
    %c0_49 = arith.constant 0 : index
    %67 = vector.load %arg7[%c0_48, %c0_49] : memref<8x128xf32, #tpu.memory_space<vmem>>, vector<8x128xf32>
    tpu.vector_store %arg7[%c0_48, %c0_49], %66 {strides = array<i32>} : memref<8x128xf32, #tpu.memory_space<vmem>>, vector<8x128xf32>,
    return
  }
}

</mosaic_0001>

<bundles_post_ra>
// kernel: critic_forward.1
= control target key start
LH: loop header
LB: loop body
LE: loop exit
PB: predicated region body
PF: predicated region fallthrough
CT: control target
= control target key end

     0   :  { %12 = vsyncpa [#allocation3], 0  ;;  %s1497_s0 = inlined_call_operand.vmem [shape: f32[8,128], index: 0, kind: input, shape index: {}]   ;;  %s1498_s1 = inlined_call_operand.vmem [shape: f32[8,128], index: 1, kind: input, shape index: {}]   ;;  %s1499_s2 = inlined_call_operand.hbm [shape: bf16[128,256], index: 2, kind: input, shape index: {}]   ;;  %s1500_s3 = inlined_call_operand.hbm [shape: bf16[256,128], index: 3, kind: input, shape index: {}]   ;;  %s1501_s4 = inlined_call_operand.hbm [shape: bf16[256,128], index: 4, kind: input, shape index: {}]   ;;  %s1502_s5 = inlined_call_operand.hbm [shape: bf16[4,128,128], index: 5, kind: input, shape index: {}]   ;;  %s1503_s6 = inlined_call_operand.hbm [shape: f32[7,8,256], index: 6, kind: input, shape index: {}]   ;;  %s1504_s7 = inlined_call_operand.vmem [shape: f32[8,128], index: 7, kind: output, shape index: {}]  }
   0x1   :  { %13 = vsyncpa [#allocation5], 0  ;;  %s36_s26 = sshll.u32 %s1500_s3, 4  ;;  %s37_s26 = int_to_ptr.hbm [resolvable:$true] %s36_s26 }
   0x2   :  { %14 = vsyncpa [#allocation8], 0  ;;  %s1422_s27 = smov [#allocation4]   ;;  %s62_s8 = sshll.u32 %s1502_s5, 4  ;;  %s63_s8 = int_to_ptr.hbm [resolvable:$true] %s62_s8 }
   0x3   :  { %s38_s28 = sshll.u32 %s1422_s27, 4  ;;  %s1423_s9 = smov 64   ;;  %s39_s28 = int_to_ptr.vmem [resolvable:$true] %s38_s28 }
   0x4   :  { %s1424_s10 = smov 4   ;;  %s1425_s11 = smov [#allocation7]  }
   0x5   :  { %44 = dma.hbm_to_vmem [thread:$0]  %s37_s26, 2048, %s39_s28, [#allocation5], %s1423_s9, %s1423_s9, %s1424_s10  }
   0x6   :  { %s64_s12 = sshll.u32 %s1425_s11, 4  ;;  %s23_s15 = sshll.u32 %s1499_s2, 4  ;;  %s65_s12 = int_to_ptr.vmem [resolvable:$true] %s64_s12  ;;  %s24_s15 = int_to_ptr.hbm [resolvable:$true] %s23_s15 }
   0x7   :  { %70 = dma.hbm_to_vmem [thread:$0]  %s63_s8, 4096, %s65_s12, [#allocation8], %s1423_s9, %s1423_s9, %s1424_s10  }
   0x8   :  { %s1426_s3 = smov [#allocation2]   ;;  %s49_s5 = sshll.u32 %s1501_s4, 4  ;;  %s50_s5 = int_to_ptr.hbm [resolvable:$true] %s49_s5 }
   0x9   :  { %s25_s16 = sshll.u32 %s1426_s3, 4  ;;  %s1427_s19 = smov 128   ;;  %s26_s16 = int_to_ptr.vmem [resolvable:$true] %s25_s16 }
   0xa   :  { %s1428_s20 = smov 8   ;;  %s1429_s21 = smov [#allocation6]  }
   0xb   :  { %31 = dma.hbm_to_vmem [thread:$0]  %s24_s15, 2048, %s26_s16, [#allocation3], %s1427_s19, %s1427_s19, %s1428_s20  }
   0xc   :  { %s51_s22 = sshll.u32 %s1429_s21, 4  ;;  %s75_s2 = sshll.u32 %s1503_s6, 4  ;;  %s52_s22 = int_to_ptr.vmem [resolvable:$true] %s51_s22  ;;  %s76_s2 = int_to_ptr.hbm [resolvable:$true] %s75_s2 }
   0xd   :  { %57 = dma.hbm_to_vmem [thread:$0]  %s50_s5, 2048, %s52_s22, [#allocation5], %s1423_s9, %s1423_s9, %s1424_s10  }
   0xe   :  { %s1430_s25 = smov [#allocation9]   ;;  %s1431_s27 = smov 256  }
   0xf   :  { %s77_s26 = sshll.u32 %s1430_s25, 4  ;;  %s1432_s28 = smov 16   ;;  %s78_s26 = int_to_ptr.vmem [resolvable:$true] %s77_s26 }
  0x10   :  { %83 = dma.hbm_to_vmem [thread:$0]  %s76_s2, 1792, %s78_s26, [#allocation8], %s1431_s27, %s1431_s27, %s1432_s28  }
  0x11   :  { %1416 = dma.done.wait [#allocation3], 2048  }
  0x12   :  { %1417 = vsyncadd [#allocation3], 4294965248 }
  0x13   :  { %1418 = dma.done.wait [#allocation5], 4096  }
  0x14   :  { %1419 = vsyncadd [#allocation5], 4294963200 }
  0x15   :  { %1420 = dma.done.wait [#allocation8], 5888  }
  0x16   :  { %1421 = vsyncadd [#allocation8], 4294961408  ;;  %v943_v0 = vld [vmem:[#allocation2 + $0x70] sm:$0xf]  ;;  %v1220_v1 = vld [vmem:[#allocation2 + $0x74] sm:$0xf0] }
  0x17   :  { %v1219_v2 = vld [vmem:[#allocation2 + $0x74] sm:$0xf]  ;;  %v944_v3 = vor.u32 %v1220_v1, %v943_v0  ;;  %v945_v4 = vld [vmem:[#allocation2 + $0x78] sm:$0xf0]  ;;  %v935_v5 = vld [vmem:[#allocation2 + $0x60] sm:$0xf] }
  0x18   :  { %v1218_v6 = vld [vmem:[#allocation2 + $0x64] sm:$0xf0]  ;;  %v948_v7 = vor.u32 %v1219_v2, %v945_v4  ;;  %v1217_v8 = vld [vmem:[#allocation2 + $0x64] sm:$0xf]  ;;  %v937_v9 = vld [vmem:[#allocation2 + $0x68] sm:$0xf0] }
  0x19   :  { %204 = vmatpush.bf16.msra.mxu0 %v944_v3  ;;  %v936_v10 = vor.u32 %v1218_v6, %v935_v5  ;;  %v940_v11 = vor.u32 %v1217_v8, %v937_v9  ;;  %v927_v12 = vld [vmem:[#allocation2 + $0x50] sm:$0xf]  ;;  %v1216_v13 = vld [vmem:[#allocation2 + $0x54] sm:$0xf0]  ;;  %v1215_v14 = vld [vmem:[#allocation2 + $0x54] sm:$0xf] }
  0x1a   :  { %217 = vmatpush.bf16.msra.mxu1 %v948_v7  ;;  %v929_v15 = vld [vmem:[#allocation2 + $0x58] sm:$0xf0]  ;;  %v928_v16 = vor.u32 %v1216_v13, %v927_v12  ;;  %v919_v18 = vld [vmem:[#allocation2 + $0x40] sm:$0xf]  ;;  %v1214_v19 = vld [vmem:[#allocation2 + $0x44] sm:$0xf0] }
  0x1b   :  { %v932_v17 = vor.u32 %v1215_v14, %v929_v15  ;;  %v1213_v20 = vld [vmem:[#allocation2 + $0x44] sm:$0xf]  ;;  %v921_v21 = vld [vmem:[#allocation2 + $0x48] sm:$0xf0]  ;;  %v920_v22 = vor.u32 %v1214_v19, %v919_v18  ;;  %v1228_v23 = vld [vmem:[#allocation4 + $0x38] sm:$0xff] }
  0x1c   :  { %v1236_v24 = vld [vmem:[#allocation4 + $0x78] sm:$0xff]  ;;  %v924_v25 = vor.u32 %v1213_v20, %v921_v21  ;;  %v911_v26 = vld [vmem:[#allocation2 + $0x30] sm:$0xf]  ;;  %v1211_v28 = vld [vmem:[#allocation2 + $0x34] sm:$0xf]  ;;  %364 = vmatpush.bf16.msra.mxu2 %v1228_v23 }
  0x1d   :  { %205 = vmatpush.bf16.msra.mxu0 %v936_v10  ;;  %v1212_v27 = vld [vmem:[#allocation2 + $0x34] sm:$0xf0]  ;;  %v913_v29 = vld [vmem:[#allocation2 + $0x38] sm:$0xf0]  ;;  %377 = vmatpush.bf16.msra.mxu3 %v1236_v24  ;;  %v1227_v30 = vld [vmem:[#allocation4 + $0x30] sm:$0xff] }
  0x1e   :  { %218 = vmatpush.bf16.msra.mxu1 %v940_v11  ;;  %v1235_v31 = vld [vmem:[#allocation4 + $0x70] sm:$0xff]  ;;  %v912_v32 = vor.u32 %v1212_v27, %v911_v26  ;;  %v916_v33 = vor.u32 %v1211_v28, %v913_v29  ;;  %v903_v34 = vld [vmem:[#allocation2 + $0x20] sm:$0xf]  ;;  %v1210_v35 = vld [vmem:[#allocation2 + $0x24] sm:$0xf0] }
  0x1f   :  { %v1209_v36 = vld [vmem:[#allocation2 + $0x24] sm:$0xf]  ;;  %v905_v37 = vld [vmem:[#allocation2 + $0x28] sm:$0xf0]  ;;  %v904_v40 = vor.u32 %v1210_v35, %v903_v34  ;;  %v895_v42 = vld [vmem:[#allocation2 + $0x10] sm:$0xf] }
  0x20   :  { %365 = vmatpush.bf16.msra.mxu2 %v1227_v30  ;;  %v1226_v38 = vld [vmem:[#allocation4 + $0x28] sm:$0xff]  ;;  %v908_v41 = vor.u32 %v1209_v36, %v905_v37  ;;  %v1208_v43 = vld [vmem:[#allocation2 + $0x14] sm:$0xf0]  ;;  %v1207_v44 = vld [vmem:[#allocation2 + $0x14] sm:$0xf] }
  0x21   :  { %206 = vmatpush.bf16.msra.mxu0 %v928_v16  ;;  %378 = vmatpush.bf16.msra.mxu3 %v1235_v31  ;;  %v1234_v39 = vld [vmem:[#allocation4 + $0x68] sm:$0xff]  ;;  %v897_v45 = vld [vmem:[#allocation2 + $0x18] sm:$0xf0]  ;;  %v1225_v46 = vld [vmem:[#allocation4 + $0x20] sm:$0xff]  ;;  %v896_v48 = vor.u32 %v1208_v43, %v895_v42 }
  0x22   :  { %219 = vmatpush.bf16.msra.mxu1 %v932_v17  ;;  %v1233_v47 = vld [vmem:[#allocation4 + $0x60] sm:$0xff]  ;;  %v900_v49 = vor.u32 %v1207_v44, %v897_v45  ;;  %v1206_v51 = vld [vmem:[#allocation2 + $0x4] sm:$0xf0]  ;;  %v889_v53 = vld [vmem:[#allocation2 + $0x8] sm:$0xf0] }
  0x23   :  { %v887_v50 = vld [vmem:[#allocation2] sm:$0xf]  ;;  %v1205_v52 = vld [vmem:[#allocation2 + $0x4] sm:$0xf]  ;;  %v1224_v54 = vld [vmem:[#allocation4 + $0x18] sm:$0xff] }
  0x24   :  { %366 = vmatpush.bf16.msra.mxu2 %v1226_v38  ;;  %v1232_v55 = vld [vmem:[#allocation4 + $0x58] sm:$0xff]  ;;  %v888_v56 = vor.u32 %v1206_v51, %v887_v50  ;;  %v104_v57 = vld [vmem:[%s1497_s0] sm:$0xff]  ;;  %v892_v58 = vor.u32 %v1205_v52, %v889_v53  ;;  %v1223_v59 = vld [vmem:[#allocation4 + $0x10] sm:$0xff] }
  0x25   :  { %207 = vmatpush.bf16.msra.mxu0 %v920_v22  ;;  %379 = vmatpush.bf16.msra.mxu3 %v1234_v39  ;;  %v1231_v60 = vld [vmem:[#allocation4 + $0x50] sm:$0xff]  ;;  %v121_v61 = vpack.c.bf16 %v104_v57, %v104_v57  ;;  %v1222_v62 = vld [vmem:[#allocation4 + $0x8] sm:$0xff]  ;;  %v1221_v0 = vld [vmem:[#allocation4] sm:$0xff] }
  0x26   :  { %220 = vmatpush.bf16.msra.mxu1 %v924_v25  ;;  %v1230_v63 = vld [vmem:[#allocation4 + $0x48] sm:$0xff]  ;;  %v1229_v1 = vld [vmem:[#allocation4 + $0x40] sm:$0xff]  ;;  %v1244_v2 = vld [vmem:[#allocation7 + $0x38] sm:$0xff] }
  0x27   :  { %v1243_v3 = vld [vmem:[#allocation7 + $0x30] sm:$0xff]  ;;  %v1242_v4 = vld [vmem:[#allocation7 + $0x28] sm:$0xff]  ;;  %v1241_v5 = vld [vmem:[#allocation7 + $0x20] sm:$0xff] }
  0x28   :  { %367 = vmatpush.bf16.msra.mxu2 %v1225_v46  ;;  %v1240_v6 = vld [vmem:[#allocation7 + $0x18] sm:$0xff]  ;;  %v1239_v7 = vld [vmem:[#allocation7 + $0x10] sm:$0xff]  ;;  %v122_v8 = vld [vmem:[#allocation9] sm:$0xff] }
  0x29   :  { %208 = vmatpush.bf16.msra.mxu0 %v912_v32  ;;  %380 = vmatpush.bf16.msra.mxu3 %v1233_v47  ;;  %v123_v9 = vld [vmem:[#allocation9 + $0x8] sm:$0xff]  ;;  %v1237_v21 = vld [vmem:[#allocation7] sm:$0xff]  ;;  %v1252_v22 = vld [vmem:[#allocation7 + $0x78] sm:$0xff] }
  0x2a   :  { %221 = vmatpush.bf16.msra.mxu1 %v916_v33  ;;  %v1238_v20 = vld [vmem:[#allocation7 + $0x8] sm:$0xff]  ;;  %v1251_v23 = vld [vmem:[#allocation7 + $0x70] sm:$0xff]  ;;  %v1249_v25 = vld [vmem:[#allocation7 + $0x60] sm:$0xff] }
  0x2b   :  { %v1250_v24 = vld [vmem:[#allocation7 + $0x68] sm:$0xff]  ;;  %v1248_v26 = vld [vmem:[#allocation7 + $0x58] sm:$0xff]  ;;  %v1247_v27 = vld [vmem:[#allocation7 + $0x50] sm:$0xff] }
  0x2c   :  { %368 = vmatpush.bf16.msra.mxu2 %v1224_v54  ;;  %v267_v28 = vld [vmem:[#allocation9 + $0x10] sm:$0xff]  ;;  %v1246_v37 = vld [vmem:[#allocation7 + $0x48] sm:$0xff]  ;;  %v1245_v38 = vld [vmem:[#allocation7 + $0x40] sm:$0xff] }
  0x2d   :  { %209 = vmatpush.bf16.msra.mxu0 %v904_v40  ;;  %381 = vmatpush.bf16.msra.mxu3 %v1232_v55  ;;  %v1268_v39 = vld [vmem:[#allocation6 + $0x78] sm:$0xff]  ;;  %v1259_v42 = vld [vmem:[#allocation6 + $0x30] sm:$0xff]  ;;  %v1266_v43 = vld [vmem:[#allocation6 + $0x68] sm:$0xff] }
  0x2e   :  { %222 = vmatpush.bf16.msra.mxu1 %v908_v41  ;;  %v1260_v40 = vld [vmem:[#allocation6 + $0x38] sm:$0xff]  ;;  %v1267_v41 = vld [vmem:[#allocation6 + $0x70] sm:$0xff]  ;;  %v1258_v44 = vld [vmem:[#allocation6 + $0x28] sm:$0xff] }
  0x2f   :  { %v1265_v45 = vld [vmem:[#allocation6 + $0x60] sm:$0xff]  ;;  %v1264_v47 = vld [vmem:[#allocation6 + $0x58] sm:$0xff]  ;;  %v1255_v50 = vld [vmem:[#allocation6 + $0x10] sm:$0xff] }
  0x30   :  { %369 = vmatpush.bf16.msra.mxu2 %v1223_v59  ;;  %v1257_v46 = vld [vmem:[#allocation6 + $0x20] sm:$0xff]  ;;  %v1262_v52 = vld [vmem:[#allocation6 + $0x48] sm:$0xff] }
  0x31   :  { %210 = vmatpush.bf16.msra.mxu0 %v896_v48  ;;  %382 = vmatpush.bf16.msra.mxu3 %v1231_v60  ;;  %v1256_v48 = vld [vmem:[#allocation6 + $0x18] sm:$0xff]  ;;  %v409_v51 = vld [vmem:[#allocation9 + $0x20] sm:$0xff]  ;;  %v1254_v59 = vld [vmem:[#allocation6 + $0x8] sm:$0xff] }
  0x32   :  { %223 = vmatpush.bf16.msra.mxu1 %v900_v49  ;;  %v1263_v49 = vld [vmem:[#allocation6 + $0x50] sm:$0xff]  ;;  %v1261_v55 = vld [vmem:[#allocation6 + $0x40] sm:$0xff] }
  0x33   :  { %v554_v60 = vld [vmem:[%s1498_s1] sm:$0xff] }
  0x34   :  { %370 = vmatpush.bf16.msra.mxu2 %v1222_v62  ;;  %v1253_v62 = vld [vmem:[#allocation6] sm:$0xff] }
  0x35   :  { %211 = vmatpush.bf16.msra.mxu0 %v888_v56  ;;  %383 = vmatpush.bf16.msra.mxu3 %v1230_v63  ;;  %v1276_v63 = vld [vmem:[#allocation7 + $0xb8] sm:$0xff] }
  0x36   :  { %224 = vmatpush.bf16.msra.mxu1 %v892_v58 }
  0x38   :  { %212 = vmatmul.bf16.vlgmr.msra.gmra.mxu0 %v121_v61  ;;  %371 = vmatpush.bf16.msra.mxu2 %v1221_v0  ;;  %v1275_v0 = vld [vmem:[#allocation7 + $0xb0] sm:$0xff] }
  0x39   :  { %225 = vmatmul.bf16.vlgmr.msra.gmra.mxu1 %v121_v61  ;;  %384 = vmatpush.bf16.msra.mxu3 %v1229_v1  ;;  %v588_v61 = vpack.c.bf16 %v554_v60, %v554_v60  ;;  %v1274_v1 = vld [vmem:[#allocation7 + $0xa8] sm:$0xff] }
  0x3a   :  { %458 = vmatpush.bf16.msrb.mxu0 %v1244_v2  ;;  %540 = vmatpush.bf16.msrb.mxu1 %v1252_v22  ;;  %v1273_v2 = vld [vmem:[#allocation7 + $0xa0] sm:$0xff] }
  0x3c   :  { %687 = vmatpush.bf16.msrb.mxu2 %v1260_v40 }
  0x3d   :  { %700 = vmatpush.bf16.msrb.mxu3 %v1268_v39 }
  0x3e   :  { %459 = vmatpush.bf16.msrb.mxu0 %v1243_v3  ;;  %541 = vmatpush.bf16.msrb.mxu1 %v1251_v23  ;;  %v491_v3 = vld [vmem:[#allocation9 + $0x30] sm:$0xff] }
  0x40   :  { %688 = vmatpush.bf16.msrb.mxu2 %v1259_v42 }
  0x41   :  { %701 = vmatpush.bf16.msrb.mxu3 %v1267_v41 }
  0x42   :  { %460 = vmatpush.bf16.msrb.mxu0 %v1242_v4  ;;  %542 = vmatpush.bf16.msrb.mxu1 %v1250_v24 }
  0x44   :  { %689 = vmatpush.bf16.msrb.mxu2 %v1258_v44 }
  0x45   :  { %702 = vmatpush.bf16.msrb.mxu3 %v1266_v43 }
  0x46   :  { %461 = vmatpush.bf16.msrb.mxu0 %v1241_v5  ;;  %543 = vmatpush.bf16.msrb.mxu1 %v1249_v25 }
  0x48   :  { %690 = vmatpush.bf16.msrb.mxu2 %v1257_v46 }
  0x49   :  { %703 = vmatpush.bf16.msrb.mxu3 %v1265_v45 }
  0x4a   :  { %462 = vmatpush.bf16.msrb.mxu0 %v1240_v6  ;;  %544 = vmatpush.bf16.msrb.mxu1 %v1248_v26 }
  0x4c   :  { %691 = vmatpush.bf16.msrb.mxu2 %v1256_v48 }
  0x4d   :  { %704 = vmatpush.bf16.msrb.mxu3 %v1264_v47 }
  0x4e   :  { %463 = vmatpush.bf16.msrb.mxu0 %v1239_v7  ;;  %545 = vmatpush.bf16.msrb.mxu1 %v1247_v27 }
  0x50   :  { %692 = vmatpush.bf16.msrb.mxu2 %v1255_v50 }
  0x51   :  { %705 = vmatpush.bf16.msrb.mxu3 %v1263_v49 }
  0x52   :  { %464 = vmatpush.bf16.msrb.mxu0 %v1238_v20  ;;  %546 = vmatpush.bf16.msrb.mxu1 %v1246_v37  ;;  %v1279_v20 = vld [vmem:[#allocation7 + $0xd0] sm:$0xff] }
  0x54   :  { %693 = vmatpush.bf16.msrb.mxu2 %v1254_v59 }
  0x55   :  { %706 = vmatpush.bf16.msrb.mxu3 %v1262_v52 }
  0x56   :  { %465 = vmatpush.bf16.msrb.mxu0 %v1237_v21  ;;  %547 = vmatpush.bf16.msrb.mxu1 %v1245_v38  ;;  %v590_v21 = vld [vmem:[#allocation9 + $0x40] sm:$0xff] }
  0x58   :  { %694 = vmatpush.bf16.msrb.mxu2 %v1253_v62 }
  0x59   :  { %707 = vmatpush.bf16.msrb.mxu3 %v1261_v55 }
  0x5a   :  { %782 = vmatpush.bf16.msra.mxu0 %v1276_v63 }
  0x5e   :  { %783 = vmatpush.bf16.msra.mxu0 %v1275_v0 }
  0x62   :  { %784 = vmatpush.bf16.msra.mxu0 %v1274_v1 }
  0x66   :  { %785 = vmatpush.bf16.msra.mxu0 %v1273_v2 }
  0xb5   :  { %v213_v10 = vpop.f32.mrf.mxu0 }
  0xb6   :  { %v214_v11 = vadd.f32 %v213_v10, %v122_v8  ;;  %v226_v12 = vpop.f32.mrf.mxu1  ;;  %v1271_v10 = vld [vmem:[#allocation7 + $0x90] sm:$0xff] }
  0xb7   :  { %v227_v13 = vadd.f32 %v226_v12, %v123_v9  ;;  %v1272_v9 = vld [vmem:[#allocation7 + $0x98] sm:$0xff]  ;;  %v1270_v12 = vld [vmem:[#allocation7 + $0x88] sm:$0xff] }
  0xb8   :  { %v230_v14 = vmax.f32 %v214_v11, 0.0  ;;  %786 = vmatpush.bf16.msra.mxu0 %v1272_v9 }
  0xb9   :  { %v231_v15 = vmax.f32 %v227_v13, 0.0 }
  0xba   :  { %v264_v16 = vpack.c.bf16 %v230_v14, %v230_v14  ;;  %v1269_v14 = vld [vmem:[#allocation7 + $0x80] sm:$0xff] }
  0xbb   :  { %v265_v17 = vpack.c.bf16 %v231_v15, %v231_v15  ;;  %v1284_v15 = vld [vmem:[#allocation7 + $0xf8] sm:$0xff] }
  0xbc   :  { %372 = vmatmul.bf16.vlgmr.msra.gmra.mxu2 %v264_v16  ;;  %787 = vmatpush.bf16.msra.mxu0 %v1271_v10  ;;  %v1283_v16 = vld [vmem:[#allocation7 + $0xf0] sm:$0xff] }
  0xbd   :  { %385 = vmatmul.bf16.vlgmr.msra.gmra.mxu3 %v265_v17  ;;  %v215_v18 = vpop.f32.mrf.mxu0  ;;  %864 = vmatpush.bf16.msra.mxu1 %v1284_v15  ;;  %v1282_v17 = vld [vmem:[#allocation7 + $0xe8] sm:$0xff] }
  0xbe   :  { %v228_v19 = vpop.f32.mrf.mxu1  ;;  %v1281_v18 = vld [vmem:[#allocation7 + $0xe0] sm:$0xff] }
  0xbf   :  { %v1280_v19 = vld [vmem:[#allocation7 + $0xd8] sm:$0xff] }
  0xc0   :  { %788 = vmatpush.bf16.msra.mxu0 %v1270_v12 }
  0xc1   :  { %865 = vmatpush.bf16.msra.mxu1 %v1283_v16 }
  0xc4   :  { %789 = vmatpush.bf16.msra.mxu0 %v1269_v14 }
  0xc5   :  { %866 = vmatpush.bf16.msra.mxu1 %v1282_v17 }
  0xc9   :  { %867 = vmatpush.bf16.msra.mxu1 %v1281_v18 }
  0xcd   :  { %708 = vmatmul.bf16.vlgmr.msrb.gmra.mxu3 %v588_v61  ;;  %868 = vmatpush.bf16.msra.mxu1 %v1280_v19 }
  0xd1   :  { %869 = vmatpush.bf16.msra.mxu1 %v1279_v20 }
 0x13f   :  { %v373_v29 = vpop.f32.mrf.mxu2 }
 0x140   :  { %v374_v30 = vadd.f32 %v373_v29, %v267_v28  ;;  %v386_v31 = vpop.f32.mrf.mxu3  ;;  %v1278_v28 = vld [vmem:[#allocation7 + $0xc8] sm:$0xff]  ;;  %v1277_v29 = vld [vmem:[#allocation7 + $0xc0] sm:$0xff] }
 0x141   :  { %870 = vmatpush.bf16.msra.mxu1 %v1278_v28 }
 0x142   :  { %v387_v32 = vadd.f32 %v386_v31, %v374_v30  ;;  %v733_v30 = vld [vmem:[#allocation9 + $0x50] sm:$0xff] }
 0x144   :  { %v390_v33 = vmax.f32 %v387_v32, 0.0 }
 0x145   :  { %871 = vmatpush.bf16.msra.mxu1 %v1277_v29 }
 0x146   :  { %v407_v34 = vpack.c.bf16 %v390_v33, %v390_v33 }
 0x147   :  { %v375_v35 = vpop.f32.mrf.mxu2 }
 0x148   :  { %v388_v36 = vpop.f32.mrf.mxu3  ;;  %466 = vmatmul.bf16.vlgmr.msrb.gmra.mxu0 %v407_v34 }
 0x149   :  { %v815_v36 = vld [vmem:[#allocation9 + $0x60] sm:$0xff] }
 0x150   :  { %v709_v11 = vpop.f32.mrf.mxu3 }
 0x158   :  { %v711_v13 = vpop.f32.mrf.mxu3 }
 0x1c5   :  { %v467_v53 = vpop.f32.mrf.mxu0 }
 0x1c6   :  { %v468_v54 = vadd.f32 %v467_v53, %v409_v51 }
 0x1c8   :  { %v471_v56 = vmax.f32 %v468_v54, 0.0 }
 0x1ca   :  { %v489_v57 = vpack.c.bf16 %v471_v56, %v471_v56 }
 0x1cc   :  { %548 = vmatmul.bf16.vlgmr.msrb.gmra.mxu1 %v489_v57 }
 0x1cd   :  { %v469_v58 = vpop.f32.mrf.mxu0 }
 0x249   :  { %v549_v4 = vpop.f32.mrf.mxu1 }
 0x24a   :  { %v550_v5 = vadd.f32 %v549_v4, %v491_v3 }
 0x24c   :  { %v553_v6 = vmax.f32 %v550_v5, 0.0 }
 0x24e   :  { %v587_v7 = vpack.c.bf16 %v553_v6, %v553_v6 }
 0x250   :  { %695 = vmatmul.bf16.vlgmr.msrb.gmra.mxu2 %v587_v7 }
 0x251   :  { %v551_v8 = vpop.f32.mrf.mxu1 }
 0x2d3   :  { %v696_v22 = vpop.f32.mrf.mxu2 }
 0x2d4   :  { %v697_v23 = vadd.f32 %v696_v22, %v590_v21 }
 0x2d6   :  { %v710_v24 = vadd.f32 %v709_v11, %v697_v23 }
 0x2d8   :  { %v713_v25 = vmax.f32 %v710_v24, 0.0 }
 0x2da   :  { %v731_v26 = vpack.c.bf16 %v713_v25, %v713_v25 }
 0x2db   :  { %v698_v27 = vpop.f32.mrf.mxu2 }
 0x2dc   :  { %790 = vmatmul.bf16.vlgmr.msra.gmra.mxu0 %v731_v26 }
 0x359   :  { %v791_v31 = vpop.f32.mrf.mxu0 }
 0x35a   :  { %v792_v32 = vadd.f32 %v791_v31, %v733_v30 }
 0x35c   :  { %v795_v33 = vmax.f32 %v792_v32, 0.0 }
 0x35e   :  { %v813_v34 = vpack.c.bf16 %v795_v33, %v795_v33 }
 0x360   :  { %872 = vmatmul.bf16.vlgmr.msra.gmra.mxu1 %v813_v34 }
 0x361   :  { %v793_v35 = vpop.f32.mrf.mxu0 }
 0x3dd   :  { %v873_v37 = vpop.f32.mrf.mxu1 }
 0x3de   :  { %v874_v38 = vadd.f32 %v873_v37, %v815_v36 }
 0x3e0   :  { %877 = vst [vmem:[%s1504_s7] sm:$0xff] %v874_v38 }
 0x3e5   :  { %v875_v39 = vpop.f32.mrf.mxu1 }
 0x3e6   :  { %882 = vsyncpa [#allocation3], 1 }
 0x3e7   :  { %883 = vsyncpa [#allocation5], 1 }
 0x3e8   :  { %884 = vsyncpa [#allocation8], 1 }

</bundles_post_ra>
